<compile_context>
chip_gen: v6e
topology: v6e:2x2x1
jax: 0.10.0
libtpu: 0.0.40
codegen_flags: <defaults>
</compile_context>

<pallas_src>
import jax
import jax.numpy as jnp
from jax.experimental import pallas as pl
from jax.experimental.pallas import tpu as pltpu


_VMEM_LIMIT_BYTES = 32 * 1024 * 1024     # safe scoped limit on v5e/v6e/v7x
_BLOCK_BUDGET_BYTES = 8 * 1024 * 1024    # budget for ~4 live copies of the x/o tile
_MIN_BLOCK_BYTES = 256 * 1024            # don't shrink tiles below this


# ---------------------------------------------------------------------------
# Fused path: one (Nb, C, HW) tile per grid step (pool + FCs + rescale).
# ---------------------------------------------------------------------------
def _ca_fused_kernel(x_ref, w1t_ref, b1_ref, w2t_ref, b2_ref, o_ref):
    x = x_ref[...]                                            # (Nb, C, HW), input dtype
    # Global sum-pool over the spatial (lane) axis, accumulated in f32.
    # The 1/HW normalization is folded into w1t by the wrapper.
    y = jnp.sum(x.astype(jnp.float32), axis=-1)               # (Nb, C)
    # FC1 + ReLU:  (Nb, C) @ (C, Cr) + (1, Cr)
    z = jnp.dot(y, w1t_ref[...], preferred_element_type=jnp.float32) + b1_ref[...]
    z = jnp.maximum(z, 0.0)
    # FC2 + sigmoid:  (Nb, Cr) @ (Cr, C) + (1, C)
    a = jnp.dot(z, w2t_ref[...], preferred_element_type=jnp.float32) + b2_ref[...]
    a = jax.nn.sigmoid(a)                                     # (Nb, C) f32
    # Channel-wise rescale broadcast over the lane (spatial) axis; store in the
    # original input dtype (no wrapper converts).
    o_ref[...] = (x.astype(jnp.float32) * a[:, :, None]).astype(o_ref.dtype)


# ---------------------------------------------------------------------------
# Split path (single image tile too large): HW-tiled pool+FC, then rescale.
# ---------------------------------------------------------------------------
def _ca_pool_fc_kernel(x_ref, w1t_ref, b1_ref, w2t_ref, b2_ref, a_ref, acc_ref):
    h = pl.program_id(1)

    @pl.when(h == 0)
    def _():
        acc_ref[...] = jnp.zeros_like(acc_ref)

    # Partial channel sums over this HW tile, accumulated in f32.
    acc_ref[...] += jnp.sum(x_ref[...].astype(jnp.float32), axis=-1)     # (1, C)

    @pl.when(h == pl.num_programs(1) - 1)
    def _():
        z = jnp.dot(acc_ref[...], w1t_ref[...],
                    preferred_element_type=jnp.float32) + b1_ref[...]
        z = jnp.maximum(z, 0.0)
        att = jnp.dot(z, w2t_ref[...],
                      preferred_element_type=jnp.float32) + b2_ref[...]
        a_ref[...] = jax.nn.sigmoid(att)[:, :, None]                     # (1, C, 1)


def _ca_rescale_kernel(x_ref, a_ref, o_ref):
    o_ref[...] = (x_ref[...].astype(jnp.float32) * a_ref[...]).astype(o_ref.dtype)


# ---------------------------------------------------------------------------
# Tiling helpers
# ---------------------------------------------------------------------------
def _choose_batch_tile(n, per_image_bytes, block_budget_bytes):
    """Largest batch tile Nb (dividing n) whose ~4 live x/o copies fit the
    budget, preferring >= 4 grid steps and an even step count (so both v7x
    TensorCores get >= 2 pipelined steps) while keeping blocks >= ~256 KiB."""
    max_nb = max(1, block_budget_bytes // (4 * per_image_bytes))
    divisors = [d for d in range(1, n + 1) if n % d == 0 and d <= max_nb] or [1]

    def score(d):
        steps = n // d
        block = d * per_image_bytes
        return (steps >= 4, steps % 2 == 0, block >= _MIN_BLOCK_BYTES, block)

    return max(divisors, key=score)


def _choose_hw_tile(hw, row_bytes, block_budget_bytes):
    """Largest HW tile (dividing hw, multiple of 128) whose ~4 live x/o copies
    fit the budget; falls back to the full extent when no such tile exists."""
    max_hwt = max(1, block_budget_bytes // (4 * row_bytes))
    if hw <= max_hwt:
        return hw
    t = (max_hwt // 128) * 128
    while t >= 128:
        if hw % t == 0:
            return t
        t -= 128
    # TODO(synk): HW not divisible by any feasible 128-multiple tile — would
    # need masked tail handling; fall back to the full (oversized) extent.
    return hw


# ---------------------------------------------------------------------------
# Public wrapper
# ---------------------------------------------------------------------------
def ca_layer(x_nchw, w1, b1, w2, b2, *, block_budget_bytes=_BLOCK_BUDGET_BYTES):
    """Channel attention. x_nchw: (N, C, H, W) in any float dtype (preserved).
    w1: (C//r, C), b1: (C//r,), w2: (C, C//r), b2: (C,) — PyTorch Conv2d(.,.,1)
    weights squeezed to 2-D."""
    N, C, H, W = x_nchw.shape
    HW = H * W
    Cr = w1.shape[0]
    dtype = x_nchw.dtype
    itemsize = jnp.dtype(dtype).itemsize

    x_flat = x_nchw.reshape(N, C, HW)                 # keep original dtype
    # Fold 1/HW pooling scale into FC1; pre-transpose both weights so the
    # in-kernel FCs are plain row-major matmuls (no in-kernel transposes).
    w1t = w1.astype(jnp.float32).T / float(HW)        # (C, Cr)
    w2t = w2.astype(jnp.float32).T                    # (Cr, C)
    b1r = b1.astype(jnp.float32).reshape(1, Cr)
    b2r = b2.astype(jnp.float32).reshape(1, C)

    per_image_bytes = C * HW * itemsize
    compiler_params_1d = pltpu.CompilerParams(
        dimension_semantics=("parallel",),
        vmem_limit_bytes=_VMEM_LIMIT_BYTES,
    )

    if 4 * per_image_bytes <= block_budget_bytes:
        # -------------------- fused path --------------------
        Nb = _choose_batch_tile(N, per_image_bytes, block_budget_bytes)
        grid = (N // Nb,)
        cost_estimate = pl.CostEstimate(
            flops=2 * N * C * HW + 4 * N * C * Cr,
            transcendentals=N * C,
            bytes_accessed=2 * N * C * HW * itemsize + (2 * C * Cr + C + Cr) * 4,
        )
        out_flat = pl.pallas_call(
            _ca_fused_kernel,
            out_shape=jax.ShapeDtypeStruct((N, C, HW), dtype),
            grid_spec=pltpu.PrefetchScalarGridSpec(
                num_scalar_prefetch=0,
                grid=grid,
                in_specs=[
                    pl.BlockSpec((Nb, C, HW), lambda b: (b, 0, 0)),  # x batch tile
                    pl.BlockSpec((C, Cr), lambda b: (0, 0)),         # w1.T / HW
                    pl.BlockSpec((1, Cr), lambda b: (0, 0)),         # b1
                    pl.BlockSpec((Cr, C), lambda b: (0, 0)),         # w2.T
                    pl.BlockSpec((1, C), lambda b: (0, 0)),          # b2
                ],
                out_specs=pl.BlockSpec((Nb, C, HW), lambda b: (b, 0, 0)),
            ),
            compiler_params=compiler_params_1d,
            cost_estimate=cost_estimate,
        )(x_flat, w1t, b1r, w2t, b2r)
        return out_flat.reshape(N, C, H, W)

    # -------------------- split (HW-tiled) path --------------------
    HWt = _choose_hw_tile(HW, C * itemsize, block_budget_bytes)
    n_hw = HW // HWt

    # Pass 1: HW-tiled sum-pool (accumulated over the "arbitrary" HW axis),
    # then FC1/ReLU/FC2/sigmoid on the last HW step -> (N, C, 1) attention.
    attn = pl.pallas_call(
        _ca_pool_fc_kernel,
        out_shape=jax.ShapeDtypeStruct((N, C, 1), jnp.float32),
        grid_spec=pltpu.PrefetchScalarGridSpec(
            num_scalar_prefetch=0,
            grid=(N, n_hw),
            in_specs=[
                pl.BlockSpec((1, C, HWt), lambda b, h: (b, 0, h)),
                pl.BlockSpec((C, Cr), lambda b, h: (0, 0)),
                pl.BlockSpec((1, Cr), lambda b, h: (0, 0)),
                pl.BlockSpec((Cr, C), lambda b, h: (0, 0)),
                pl.BlockSpec((1, C), lambda b, h: (0, 0)),
            ],
            out_specs=pl.BlockSpec((1, C, 1), lambda b, h: (b, 0, 0)),
            scratch_shapes=[pltpu.VMEM((1, C), jnp.float32)],
        ),
        compiler_params=pltpu.CompilerParams(
            dimension_semantics=("parallel", "arbitrary"),
            vmem_limit_bytes=_VMEM_LIMIT_BYTES,
        ),
    )(x_flat, w1t, b1r, w2t, b2r)

    # Pass 2: HW-tiled channel-wise rescale, stored in the original dtype.
    out_flat = pl.pallas_call(
        _ca_rescale_kernel,
        out_shape=jax.ShapeDtypeStruct((N, C, HW), dtype),
        grid_spec=pltpu.PrefetchScalarGridSpec(
            num_scalar_prefetch=0,
            grid=(N, n_hw),
            in_specs=[
                pl.BlockSpec((1, C, HWt), lambda b, h: (b, 0, h)),
                pl.BlockSpec((1, C, 1), lambda b, h: (b, 0, 0)),
            ],
            out_specs=pl.BlockSpec((1, C, HWt), lambda b, h: (b, 0, h)),
        ),
        compiler_params=pltpu.CompilerParams(
            dimension_semantics=("parallel", "parallel"),
            vmem_limit_bytes=_VMEM_LIMIT_BYTES,
        ),
    )(x_flat, attn)
    return out_flat.reshape(N, C, H, W)


def reference_ca_layer(x, w1, b1, w2, b2):
    """Pure-JAX reference matching PyTorch CALayer.forward semantics."""
    y = jnp.mean(x, axis=(2, 3), keepdims=True)                 # (N, C, 1, 1)
    y = jnp.einsum("oc,nchw->nohw", w1, y) + b1[None, :, None, None]
    y = jnp.maximum(y, 0.0)
    y = jnp.einsum("oc,nchw->nohw", w2, y) + b2[None, :, None, None]
    y = jax.nn.sigmoid(y)
    return x * y


if __name__ == "__main__":
    # Module defaults: channel=64, reduction=16 -> hidden = 4.
    # H=W=16 -> HW=256 (multiple of 128) -> lane-dense stores in the rescale.
    N, C, H, W = 2, 64, 16, 16
    reduction = 16
    Cr = C // reduction

    key = jax.random.PRNGKey(0)
    kx, k1, k2, k3, k4 = jax.random.split(key, 5)

    x = jax.random.normal(kx, (N, C, H, W), dtype=jnp.float32)
    # PyTorch Conv2d weights (out_ch, in_ch, 1, 1), squeezed to 2-D.
    w1 = jax.random.normal(k1, (Cr, C), dtype=jnp.float32) * 0.1
    b1 = jax.random.normal(k2, (Cr,), dtype=jnp.float32) * 0.1
    w2 = jax.random.normal(k3, (C, Cr), dtype=jnp.float32) * 0.1
    b2 = jax.random.normal(k4, (C,), dtype=jnp.float32) * 0.1

    ref = reference_ca_layer(x, w1, b1, w2, b2)

    # 1) Fused path, f32.
    out = jax.block_until_ready(ca_layer(x, w1, b1, w2, b2))
    assert out.shape == (N, C, H, W) and out.dtype == jnp.float32
    assert jnp.allclose(out, ref, atol=1e-5, rtol=1e-5), "f32 mismatch vs reference"

    # 2) Fused path, bf16 preserved end-to-end (no wrapper convert passes).
    out_bf = jax.block_until_ready(ca_layer(x.astype(jnp.bfloat16), w1, b1, w2, b2))
    assert out_bf.dtype == jnp.bfloat16
    assert jnp.allclose(out_bf.astype(jnp.float32), ref, atol=5e-2, rtol=5e-2), \
        "bf16 mismatch vs reference"

    # 3) Split (HW-tiled) fallback path, forced via a tiny block budget.
    out_split = jax.block_until_ready(
        ca_layer(x, w1, b1, w2, b2, block_budget_bytes=128 * 1024))
    assert jnp.allclose(out_split, ref, atol=1e-5, rtol=1e-5), \
        "split-path mismatch vs reference"

    print("KERNEL_OK")
</pallas_src>

<mosaic_0001>
module attributes {stable_mosaic.version = 11 : i64} {
  func.func @_ca_fused_kernel(%arg0: i32, %arg1: memref<1x64x256xf32, #tpu.memory_space<vmem>>, %arg2: memref<64x4xf32, #tpu.memory_space<vmem>>, %arg3: memref<1x4xf32, #tpu.memory_space<vmem>>, %arg4: memref<4x64xf32, #tpu.memory_space<vmem>>, %arg5: memref<1x64xf32, #tpu.memory_space<vmem>>, %arg6: memref<1x64x256xf32, #tpu.memory_space<vmem>>) attributes {dimension_semantics = [#tpu.dimension_semantics<parallel>], iteration_bounds = array<i64: 2>, scalar_prefetch = 0 : i64, scratch_operands = 0 : i64, tpu.core_type = #tpu.core_type<tc>, window_params = [{transform_indices = @transform_0, window_bounds = array<i64: 1, 64, 256>}, {pipeline_mode = #tpu.pipeline_mode<synchronous>, transform_indices = @transform_1, window_bounds = array<i64: 64, 4>}, {pipeline_mode = #tpu.pipeline_mode<synchronous>, transform_indices = @transform_2, window_bounds = array<i64: 1, 4>}, {pipeline_mode = #tpu.pipeline_mode<synchronous>, transform_indices = @transform_3, window_bounds = array<i64: 4, 64>}, {pipeline_mode = #tpu.pipeline_mode<synchronous>, transform_indices = @transform_4, window_bounds = array<i64: 1, 64>}, {transform_indices = @transform_5, window_bounds = array<i64: 1, 64, 256>}]} {
    %c0 = arith.constant 0 : index
    %c0_0 = arith.constant 0 : index
    %c0_1 = arith.constant 0 : index
    %0 = vector.load %arg1[%c0, %c0_0, %c0_1] : memref<1x64x256xf32, #tpu.memory_space<vmem>>, vector<1x64x256xf32>
    %cst = arith.constant dense<0.000000e+00> : vector<1x64xf32>
    %1 = vector.multi_reduction <add>, %0, %cst [2] : vector<1x64x256xf32> to vector<1x64xf32>
    %c0_2 = arith.constant 0 : index
    %c0_3 = arith.constant 0 : index
    %2 = vector.load %arg2[%c0_2, %c0_3] : memref<64x4xf32, #tpu.memory_space<vmem>>, vector<64x4xf32>
    %cst_4 = arith.constant dense<0.000000e+00> : vector<1x4xf32>
    %3 = tpu.matmul %1, %2, %cst_4 {dimension_numbers = #tpu.dot_dimension_numbers<[1], [0], [0], [1], [0, 0, 1, 1], [], []>} : vector<1x64xf32>, vector<64x4xf32>, vector<1x4xf32> -> vector<1x4xf32>
    %c0_5 = arith.constant 0 : index
    %c0_6 = arith.constant 0 : index
    %4 = vector.load %arg3[%c0_5, %c0_6] : memref<1x4xf32, #tpu.memory_space<vmem>>, vector<1x4xf32>
    %5 = arith.addf %3, %4 : vector<1x4xf32>
    %cst_7 = arith.constant 0.000000e+00 : f32
    %6 = vector.broadcast %cst_7 : f32 to vector<1x4xf32>
    %7 = arith.maximumf %5, %6 : vector<1x4xf32>
    %c0_8 = arith.constant 0 : index
    %c0_9 = arith.constant 0 : index
    %8 = vector.load %arg4[%c0_8, %c0_9] : memref<4x64xf32, #tpu.memory_space<vmem>>, vector<4x64xf32>
    %cst_10 = arith.constant dense<0.000000e+00> : vector<1x64xf32>
    %9 = tpu.matmul %7, %8, %cst_10 {dimension_numbers = #tpu.dot_dimension_numbers<[1], [0], [0], [1], [0, 0, 1, 1], [], []>} : vector<1x4xf32>, vector<4x64xf32>, vector<1x64xf32> -> vector<1x64xf32>
    %c0_11 = arith.constant 0 : index
    %c0_12 = arith.constant 0 : index
    %10 = vector.load %arg5[%c0_11, %c0_12] : memref<1x64xf32, #tpu.memory_space<vmem>>, vector<1x64xf32>
    %11 = arith.addf %9, %10 : vector<1x64xf32>
    %12 = arith.negf %11 : vector<1x64xf32>
    %13 = math.exp %12 : vector<1x64xf32>
    %cst_13 = arith.constant 1.000000e+00 : f32
    %14 = vector.broadcast %cst_13 : f32 to vector<1x64xf32>
    %15 = arith.addf %14, %13 : vector<1x64xf32>
    %16 = arith.divf %14, %15 : vector<1x64xf32>
    %17 = vector.shape_cast %16 : vector<1x64xf32> to vector<1x64x1xf32>
    %18 = vector.broadcast %17 : vector<1x64x1xf32> to vector<1x64x256xf32>
    %19 = arith.mulf %0, %18 : vector<1x64x256xf32>
    %c0_14 = arith.constant 0 : index
    %c0_15 = arith.constant 0 : index
    %c0_16 = arith.constant 0 : index
    %20 = vector.load %arg6[%c0_14, %c0_15, %c0_16] : memref<1x64x256xf32, #tpu.memory_space<vmem>>, vector<1x64x256xf32>
    tpu.vector_store %arg6[%c0_14, %c0_15, %c0_16], %19 {strides = array<i32>} : memref<1x64x256xf32, #tpu.memory_space<vmem>>, vector<1x64x256xf32>,
    return
  }
  func.func @transform_0(%arg0: i32) -> (i32, i32, i32) {
    %c0_i32 = arith.constant 0 : i32
    %c0_i32_0 = arith.constant 0 : i32
    %c0_i32_1 = arith.constant 0 : i32
    return %arg0, %c0_i32, %c0_i32_0 : i32, i32, i32
  }
  func.func @transform_1(%arg0: i32) -> (i32, i32) {
    %c0_i32 = arith.constant 0 : i32
    %c0_i32_0 = arith.constant 0 : i32
    %c0_i32_1 = arith.constant 0 : i32
    return %c0_i32, %c0_i32_0 : i32, i32
  }
  func.func @transform_2(%arg0: i32) -> (i32, i32) {
    %c0_i32 = arith.constant 0 : i32
    %c0_i32_0 = arith.constant 0 : i32
    %c0_i32_1 = arith.constant 0 : i32
    return %c0_i32, %c0_i32_0 : i32, i32
  }
  func.func @transform_3(%arg0: i32) -> (i32, i32) {
    %c0_i32 = arith.constant 0 : i32
    %c0_i32_0 = arith.constant 0 : i32
    %c0_i32_1 = arith.constant 0 : i32
    return %c0_i32, %c0_i32_0 : i32, i32
  }
  func.func @transform_4(%arg0: i32) -> (i32, i32) {
    %c0_i32 = arith.constant 0 : i32
    %c0_i32_0 = arith.constant 0 : i32
    %c0_i32_1 = arith.constant 0 : i32
    return %c0_i32, %c0_i32_0 : i32, i32
  }
  func.func @transform_5(%arg0: i32) -> (i32, i32, i32) {
    %c0_i32 = arith.constant 0 : i32
    %c0_i32_0 = arith.constant 0 : i32
    %c0_i32_1 = arith.constant 0 : i32
    return %arg0, %c0_i32, %c0_i32_0 : i32, i32, i32
  }
}

</mosaic_0001>

<bundles_post_ra>
// kernel: tpu_custom_call.1
= control target key start
LH: loop header
LB: loop body
LE: loop exit
PB: predicated region body
PF: predicated region fallthrough
CT: control target
= control target key end

     0   :  { %10 = vsyncpa [#allocation3], 0  ;;  %s1197_s0 = inlined_call_operand.hbm [shape: f32[2,64,256], index: 0, kind: input, shape index: {}]   ;;  %s1198_s1 = inlined_call_operand.vmem [shape: f32[64,4], index: 1, kind: input, shape index: {}]   ;;  %s1199_s2 = inlined_call_operand.vmem [shape: f32[1,4], index: 2, kind: input, shape index: {}]   ;;  %s1200_s3 = inlined_call_operand.vmem [shape: f32[4,64], index: 3, kind: input, shape index: {}]   ;;  %s1201_s4 = inlined_call_operand.vmem [shape: f32[1,64], index: 4, kind: input, shape index: {}]   ;;  %s1202_s5 = inlined_call_operand.hbm [shape: f32[2,64,256], index: 5, kind: output, shape index: {}]  }
   0x1   :  { %12 = vsyncpa [#allocation3 + $0x1], 0 }
   0x2   :  { %13 = vsyncpa [#allocation4], 0 }
   0x3   :  { %15 = vsyncpa [#allocation4 + $0x1], 0  ;;  %s912_s18 = smov 0   ;;  %s914_s19 = smov 0  }
   0x4   :  { %s916_s20 = smov 0   ;;  %s918_s21 = smov 0  }
   0x5 LB: > { %s933_s22 = sadd.s32 4294967295, %s872_s21   ;;  %s669_s23 = sadd.s32 4294967294, %s872_s21   ;;  %s872_s21 = sphi %s918_s21, %s1217_s21   ;;  %s868_s20 = sphi %s916_s20, %s1216_s20   ;;  %s864_s19 = sphi %s914_s19, %s1215_s19   ;;  %s860_s18 = sphi %s912_s18, %s1214_s18  }
   0x6   : > { %s937_s24 = sadd.s32 1, %s872_s21   ;;  %s28_s25 = sadd.s32 1, %s868_s20 }
   0x7   : > { %s25_s26 = ssub.s32 %s872_s21, %s937_s24  ;;  %p35_p0 = scmp.ne.s32.totalorder %s868_s20, %s864_s19 }
   0x8   : > { %p26_p1 = scmp.eq.s32.totalorder %s25_s26, 0  ;;  %p36_p2 = scmp.eq.s32.totalorder %s872_s21, 0 }
   0x9   : > { %p41_p3 = scmp.ne.s32.totalorder %s864_s19, %s860_s18  ;;  %p42_p4 = scmp.eq.s32.totalorder %s933_s22, 0 }
   0xa   : > { %s949_s27 = scalar_select %p26_p1, %s868_s20, %s28_s25  }
   0xb   : > { %p951_p5 = por %p36_p2, %p35_p0  ;;  %p955_p6 = por %p42_p4, %p41_p3 }
   0xc   : > { %p149_p7 = scmp.eq.s32.totalorder %s933_s22, 1  ;;  %p155_p8 = scmp.eq.s32.totalorder %s669_s23, 1 }
   0xd   : > { %s1206_s29 = scalar_select %p955_p6, 1, 0 }
   0xe   : > { %p736_p10 = scmp.lt.s32.totalorder %s872_s21, 2  ;;  %p962_p11 = por %p149_p7, %p35_p0 }
   0xf   : > { %p966_p12 = por %p155_p8, %p41_p3  ;;  %s187_s7 = sand.u32 1, %s868_s20  }
  0x10   : > { %s1207_s30 = scalar_select %p962_p11, 1, 0 }
  0x11   : > { %s1208_s6 = scalar_select %p966_p12, 1, 0 }
  0x12   : > { %s687_s8 = sshll.u32 %s872_s21, 11  ;;  %s672_s9 = sshll.u32 %s187_s7, 7 }
  0x13   : > { %s975_s12 = scalar_lea.hbm %s1197_s0, %s687_s8  ;;  %s191_s13 = scalar_lea.vmem [#allocation2], %s672_s9 }
  0x14   : > { %s198_s14 = sshll.u32 %s191_s13, 4  ;;  %p979_p13 = pnand %p736_p10, %p951_p5  ;;  %s983_s14 = int_to_ptr.vmem [resolvable:$true] %s198_s14 }
  0x15   : > { %s985_s16 = scalar_lea.sflag [#allocation3], %s187_s7  ;;  %s780_s17 = scalar_lea.hbm %s975_s12, 2048 }
  0x16   : > { %p781_p0 = scmp.ne.s32.totalorder %s975_s12, %s780_s17  ;;  %p782_p1 = pneg %p979_p13 }
  0x17   : > { %s785_s26 = scalar_lea.hbm %s1197_s0, 4096  ;;  %p786_p4 = scmp.lt.s32.totalorder %s975_s12, %s1197_s0 }
  0x18   : > { %p783_p2 = pnand %p782_p1, %p781_p0  ;;  %p787_p5 = scmp.lt.s32.totalorder %s785_s26, %s780_s17 }
  0x1a   : > { %p784_p3 = pneg %p783_p2  ;;  %p788_p7 = por %p787_p5, %p786_p4 }
  0x1c   : > { %p789_p8 = pnand %p788_p7, %p784_p3 }
  0x1e   : > { %792 = shalt.err (!%p789_p8)
}
  0x1f   : > { %s793_s7 = scalar_lea.vmem %s983_s14, 2048  ;;  %s874_s9 = smov [#allocation2]  }
  0x20   : > { %p794_p10 = scmp.ne.s32.totalorder %s983_s14, %s793_s7  ;;  %s798_s10 = sshll.u32 %s874_s9, 4  ;;  %s799_s10 = int_to_ptr.vmem [resolvable:$false] %s798_s10 }
  0x21   : > { %s800_s11 = scalar_lea.vmem %s799_s10, 4096  ;;  %p801_p2 = scmp.lt.s32.totalorder %s983_s14, %s799_s10 }
  0x22   : > { %p796_p9 = pnand %p794_p10, %p782_p1  ;;  %p802_p12 = scmp.lt.s32.totalorder %s800_s11, %s793_s7 }
  0x24   : > { %p797_p0 = pneg %p796_p9  ;;  %p803_p11 = por %p802_p12, %p801_p2 }
  0x26   : > { %p804_p6 = pnand %p803_p11, %p797_p0 }
  0x28   : > { %807 = shalt.err (!%p804_p6)
}
  0x29   : > { %s875_s13 = smov 256   ;;  %s876_s17 = smov 16  }
  0x2a   : > { %731 = dma.hbm_to_vmem [thread:$0]  (!%p979_p13), %s975_s12, 2048, %s983_s14, %s985_s16, %s875_s13, %s875_s13, %s876_s17  }
  0x2b   : > { %p675_p9 = scmp.ge.s32.totalorder %s872_s21, 1  ;;  %p206_p1 = scmp.lt.s32.totalorder %s872_s21, 3 }
  0x2d   : > { %p207_p3 = pnand %p675_p9, %p206_p1 }
  0x2e   : > { %s1009_s23 = sand.u32 (!%p207_p3), 1, %s864_s19   ;;  %p1210_p6 = scmp.ne.s32.totalorder (!%p207_p3), %s1206_s29, 0 }
  0x2f   : > { %210 = sbr.rel (%p207_p3) target bundleno = 783 (0x30f), region = 40  ;;  %s676_s25 = sshll.u32 (!%p207_p3), %s1009_s23, 7 }
  0x30   : > { %s213_s26 = scalar_lea.sflag (!%p207_p3), [#allocation3], %s1009_s23  ;;  %s216_s28 = scalar_lea.vmem (!%p207_p3), [#allocation2], %s676_s25 }
  0x34   : > { %851 = dma.done.wait (%p1210_p6), %s213_s26, 2048  }
  0x35   : > { %853 = vsyncadd (%p1210_p6), %s213_s26, 4294965248  ;;  %v1019_v0 = vld [vmem:[%s216_s28] sm:$0xff]  ;;  %v1021_v1 = vld [vmem:[%s216_s28 + $0x8] sm:$0xff]  ;;  %v877_v24 = vmov 0.0   ;;  %vm878_vm0 = vmmov 0   ;;  %v300_v33 = vlaneseq  ;;  %vm311_vm1 = vcmask 130112  }
  0x36   : > { %v1023_v2 = vld [vmem:[%s216_s28 + $0x20] sm:$0xff]  ;;  %v259_v3 = vadd.f32 %v1021_v1, %v1019_v0  ;;  %v1027_v4 = vld [vmem:[%s216_s28 + $0x28] sm:$0xff]  ;;  %v1029_v5 = vld [vmem:[%s216_s28 + $0x10] sm:$0xff]  ;;  %700 = vmatprep.subr.mxu0 %v877_v24  ;;  %719 = vmatprep.subr.mxu1 %v877_v24  ;;  %vm318_vm2 = vcmask 195712   ;;  %vm325_vm3 = vcmask 261312   ;;  %vm332_vm4 = vcmask 326912  }
  0x37   : > { %v1031_v6 = vld [vmem:[%s216_s28 + $0x18] sm:$0xff]  ;;  %v265_v7 = vadd.f32 %v1027_v4, %v1023_v2  ;;  %v1035_v8 = vld [vmem:[%s216_s28 + $0x30] sm:$0xff]  ;;  %v1043_v12 = vld [vmem:[%s216_s28 + $0x40] sm:$0xff]  ;;  %716 = vmatprep.mubr.msk.f32.mxu0 %vm878_vm0, %v877_v24  ;;  %721 = vmatprep.mubr.msk.f32.mxu1 %vm878_vm0, %v877_v24  ;;  %v301_v34 = vand.u32 127, %v300_v33  ;;  %v1091_v35 = vshrl.u32 %v300_v33, 7  ;;  %vm339_vm5 = vcmask 392512  }
  0x38   : > { %v1037_v9 = vld [vmem:[%s216_s28 + $0x38] sm:$0xff]  ;;  %260 = vadd.xlane.f32.xlu0 %v259_v3  ;;  %v262_v10 = vadd.f32 %v1031_v6, %v1029_v5  ;;  %v1045_v13 = vld [vmem:[%s216_s28 + $0x48] sm:$0xff]  ;;  %v1047_v14 = vld [vmem:[%s216_s28 + $0x50] sm:$0xff]  ;;  %vm346_vm6 = vcmask 458112   ;;  %vm353_vm7 = vcmask 523712   ;;  %vm355_vm8 = vcmask 523264  }
  0x39   : > { %266 = vadd.xlane.f32.xlu1 %v265_v7  ;;  %v268_v11 = vadd.f32 %v1037_v9, %v1035_v8  ;;  %v1049_v15 = vld [vmem:[%s216_s28 + $0x58] sm:$0xff]  ;;  %v271_v16 = vadd.f32 %v1045_v13, %v1043_v12  ;;  %v1055_v18 = vld [vmem:[%s216_s28 + $0x60] sm:$0xff]  ;;  %v1057_v19 = vld [vmem:[%s216_s28 + $0x68] sm:$0xff]  ;;  %v306_v36 = vadd.s32 4294967288, %v301_v34  ;;  %v313_v37 = vadd.s32 4294967280, %v301_v34  ;;  %s1117_s10 = scalar_lea.vmem [#allocation5], %s676_s25 }
  0x3a   : > { %v274_v17 = vadd.f32 %v1049_v15, %v1047_v14  ;;  %v1059_v20 = vld [vmem:[%s216_s28 + $0x70] sm:$0xff]  ;;  %v1061_v21 = vld [vmem:[%s216_s28 + $0x78] sm:$0xff]  ;;  %v277_v22 = vadd.f32 %v1057_v19, %v1055_v18  ;;  %v288_v27 = vld [vmem:[%s1198_s1 + $0x28] sm:$0xff]  ;;  %v320_v38 = vadd.s32 4294967272, %v301_v34  ;;  %v304_v40 = vsub.s32 %v301_v34, %v1091_v35  ;;  %s688_s25 = sshll.u32 %s933_s22, 11  ;;  %s596_s11 = sshll.u32 %s1117_s10, 4  ;;  %s1150_s11 = int_to_ptr.vmem [resolvable:$true] %s596_s11 }
  0x3b   : > { %v280_v23 = vadd.f32 %v1061_v21, %v1059_v20  ;;  %v290_v25 = vld [vmem:[%s1198_s1 + $0x38] sm:$0xff]  ;;  %v289_v26 = vld [vmem:[%s1198_s1 + $0x30] sm:$0xff]  ;;  %v287_v28 = vld [vmem:[%s1198_s1 + $0x20] sm:$0xff]  ;;  %v309_v42 = vsub.s32 %v306_v36, %v1091_v35  ;;  %v327_v43 = vadd.s32 4294967264, %v301_v34  ;;  %v316_v44 = vsub.s32 %v313_v37, %v1091_v35  ;;  %s1148_s26 = scalar_lea.hbm %s1202_s5, %s688_s25  ;;  %s583_s22 = scalar_lea.sflag [#allocation4], %s1009_s23 }
  0x3c   : > { %263 = vadd.xlane.f32.xlu0 %v262_v10  ;;  %701 = vmatpush3.msra.mxu0 %v290_v25  ;;  %v286_v29 = vld [vmem:[%s1198_s1 + $0x18] sm:$0xff]  ;;  %v285_v30 = vld [vmem:[%s1198_s1 + $0x10] sm:$0xff]  ;;  %v284_v31 = vld [vmem:[%s1198_s1 + $0x8] sm:$0xff]  ;;  %v323_v45 = vsub.s32 %v320_v38, %v1091_v35  ;;  %v334_v46 = vadd.s32 4294967256, %v301_v34  ;;  %v341_v52 = vadd.s32 4294967248, %v301_v34  ;;  %v348_v56 = vadd.s32 4294967240, %v301_v34 }
  0x3d   : > { %269 = vadd.xlane.f32.xlu1 %v268_v11  ;;  %702 = vmatprep.subr.mxu0 %v877_v24  ;;  %v283_v32 = vld [vmem:[%s1198_s1] sm:$0xff]  ;;  %v330_v51 = vsub.s32 %v327_v43, %v1091_v35  ;;  %vm435_vm9 = vcmask 1043456   ;;  %vm431_vm10 = vcmask 31744   ;;  %s808_s28 = scalar_lea.vmem %s1150_s11, 2048  ;;  %p1211_p12 = scmp.ne.s32.totalorder %s1207_s30, 0 }
  0x3e   : > { %703 = vmatpush3.msra.mxu0 %v289_v26  ;;  %v337_v55 = vsub.s32 %v334_v46, %v1091_v35  ;;  %v344_v63 = vsub.s32 %v341_v52, %v1091_v35  ;;  %v351_v7 = vsub.s32 %v348_v56, %v1091_v35  ;;  %v429_v26 = vld [vmem:[%s1200_s3] sm:$0xf]  ;;  %p809_p11 = scmp.ne.s32.totalorder %s1150_s11, %s808_s28  ;;  %s879_s29 = smov [#allocation5]  }
  0x3f   : > { %704 = vmatprep.subr.mxu0 %v877_v24  ;;  %720 = vmatpush3.msk.msra.mxu1 %vm435_vm9, %v429_v26  ;;  %s812_s12 = sshll.u32 %s879_s29, 4  ;;  %s813_s12 = int_to_ptr.vmem [resolvable:$false] %s812_s12 }
  0x40   : > { %272 = vadd.xlane.f32.xlu0 %v271_v16  ;;  %705 = vmatpush3.msra.mxu0 %v288_v27  ;;  %v291_v27 = vld [vmem:[%s1199_s2] sm:$0x1]  ;;  %p810_p13 = pnand %p809_p11, %p1211_p12  ;;  %s814_s14 = scalar_lea.vmem %s813_s12, 4096 }
  0x41   : > { %275 = vadd.xlane.f32.xlu1 %v274_v17  ;;  %706 = vmatprep.subr.mxu0 %v877_v24  ;;  %p815_p5 = scmp.lt.s32.totalorder %s1150_s11, %s813_s12  ;;  %p816_p7 = scmp.lt.s32.totalorder %s814_s14, %s808_s28 }
  0x42   : > { %707 = vmatpush3.msra.mxu0 %v287_v28  ;;  %p811_p4 = pneg %p810_p13 }
  0x43   : > { %708 = vmatprep.subr.mxu0 %v877_v24  ;;  %p817_p8 = por %p816_p7, %p815_p5 }
  0x44   : > { %278 = vadd.xlane.f32.xlu0 %v277_v22  ;;  %709 = vmatpush3.msra.mxu0 %v286_v29 }
  0x45   : > { %281 = vadd.xlane.f32.xlu1 %v280_v23  ;;  %710 = vmatprep.subr.mxu0 %v877_v24  ;;  %p818_p10 = pnand %p817_p8, %p811_p4 }
  0x46   : > { %711 = vmatpush3.msra.mxu0 %v285_v30 }
  0x47   : > { %712 = vmatprep.subr.mxu0 %v877_v24 }
  0x48   : > { %713 = vmatpush3.msra.mxu0 %v284_v31 }
  0x49   : > { %714 = vmatprep.subr.mxu0 %v877_v24 }
  0x4a   : > { %715 = vmatpush3.msra.mxu0 %v283_v32  ;;  %v430_v32 = vld [vmem:[%s1201_s4] sm:$0x1] }
  0xc1   : > { %v261_v39 = vpop.xlane.xlu0 %260 }
  0xc2   : > { %v267_v41 = vpop.xlane.xlu1 %266  ;;  %v305_v48 = vrot.slane %v261_v39, %v304_v40  ;;  %v517_v40 = vsub.s32 0, %v1091_v35 }
  0xc3   : > { %v317_v53 = vrot.slane %v267_v41, %v316_v44 }
  0xc5   : > { %v264_v47 = vpop.xlane.xlu0 %263 }
  0xc6   : > { %v310_v49 = vrot.slane %v264_v47, %v309_v42  ;;  %v270_v50 = vpop.xlane.xlu1 %269 }
  0xc7   : > { %v324_v54 = vrot.slane %v270_v50, %v323_v45 }
  0xc8   : > { %v312_v57 = vsel %vm311_vm1, %v310_v49, %v305_v48 }
  0xc9   : > { %v319_v58 = vsel %vm318_vm2, %v317_v53, %v312_v57  ;;  %v273_v59 = vpop.xlane.xlu0 %272 }
  0xca   : > { %v326_v60 = vsel %vm325_vm3, %v324_v54, %v319_v58  ;;  %v331_v61 = vrot.slane %v273_v59, %v330_v51  ;;  %v276_v62 = vpop.xlane.xlu1 %275 }
  0xcb   : > { %v338_v3 = vrot.slane %v276_v62, %v337_v55 }
  0xcc   : > { %v333_v10 = vsel %vm332_vm4, %v331_v61, %v326_v60 }
  0xcd   : > { %v279_v11 = vpop.xlane.xlu0 %278  ;;  %v340_v22 = vsel %vm339_vm5, %v338_v3, %v333_v10 }
  0xce   : > { %v345_v16 = vrot.slane %v279_v11, %v344_v63  ;;  %v282_v17 = vpop.xlane.xlu1 %281 }
  0xcf   : > { %v352_v23 = vrot.slane %v282_v17, %v351_v7 }
  0xd0   : > { %v347_v24 = vsel %vm346_vm6, %v345_v16, %v340_v22 }
  0xd1   : > { %v354_v25 = vsel %vm353_vm7, %v352_v23, %v347_v24 }
  0xd2   : > { %717 = vmatmul.mubr.msk.f32.vlgmr.msra.gmra.mxu0 %vm355_vm8, %v354_v25 }
 0x192   : > { %v424_v28 = vpop.f32.mrf.mxu0 }
 0x193   : > { %v425_v29 = vadd.f32 %v424_v28, %v291_v27 }
 0x194   : > { %v718_v30 = vpop.f32.mrf.mxu0 }
 0x195   : > { %v428_v31 = vmax.f32 %v425_v29, 0.0 }
 0x197   : > { %722 = vmatmul.mubr.msk.f32.vlgmr.msra.gmra.mxu1 %vm431_vm10, %v428_v31 }
 0x257   : > { %v505_v33 = vpop.f32.mrf.mxu1 }
 0x258   : > { %v506_v34 = vadd.f32 %v505_v33, %v430_v32 }
 0x259   : > { %v723_v36 = vpop.f32.mrf.mxu1 }
 0x25a   : > { %v681_v37 = vmul.f32 -1.442695, %v506_v34 }
 0x25c   : > { %776 = vpow2.f32 %v681_v37 }
 0x269   : > { %v777_v38 = vpop.eup %776 }
 0x26a   : > { %v512_v39 = vadd.f32 1.0, %v777_v38 }
 0x26c   : > { %778 = vrcp.f32 %v512_v39 }
 0x279   : > { %v779_v41 = vpop.eup %778 }
 0x27a   : > { %v518_v42 = vrot.slane %v779_v41, %v517_v40 }
 0x27c   : > { %524 = vbcast.lane.b32.xlu1 %v518_v42, 264  ;;  %520 = vbcast.lane.b32.xlu0 %v518_v42, 256 }
 0x280   : > { %528 = vbcast.lane.b32.xlu1 %v518_v42, 272  ;;  %536 = vbcast.lane.b32.xlu0 %v518_v42, 288 }
 0x284   : > { %532 = vbcast.lane.b32.xlu1 %v518_v42, 280  ;;  %544 = vbcast.lane.b32.xlu0 %v518_v42, 304 }
 0x288   : > { %540 = vbcast.lane.b32.xlu1 %v518_v42, 296 }
 0x28c   : > { %548 = vbcast.lane.b32.xlu1 %v518_v42, 312 }
 0x2ee   : > { %v525_v43 = vpop.permute.xlu1 %524  ;;  %v521_v44 = vpop.permute.xlu0 %520 }
 0x2ef   : > { %v552_v45 = vmul.f32 %v525_v43, %v1029_v5  ;;  %v553_v46 = vmul.f32 %v525_v43, %v1031_v6  ;;  %v550_v47 = vmul.f32 %v521_v44, %v1019_v0  ;;  %v551_v35 = vmul.f32 %v521_v44, %v1021_v1 }
 0x2f1   : > { %568 = vst [vmem:[%s1117_s10 + $0x10] sm:$0xff] %v552_v45  ;;  %569 = vst [vmem:[%s1117_s10 + $0x18] sm:$0xff] %v553_v46 }
 0x2f2   : > { %566 = vst [vmem:[%s1117_s10] sm:$0xff] %v550_v47  ;;  %567 = vst [vmem:[%s1117_s10 + $0x8] sm:$0xff] %v551_v35  ;;  %v529_v5 = vpop.permute.xlu1 %528  ;;  %v537_v0 = vpop.permute.xlu0 %536 }
 0x2f3   : > { %v554_v1 = vmul.f32 %v529_v5, %v1023_v2  ;;  %v555_v6 = vmul.f32 %v529_v5, %v1027_v4  ;;  %v558_v48 = vmul.f32 %v537_v0, %v1043_v12  ;;  %v559_v49 = vmul.f32 %v537_v0, %v1045_v13 }
 0x2f5   : > { %570 = vst [vmem:[%s1117_s10 + $0x20] sm:$0xff] %v554_v1  ;;  %571 = vst [vmem:[%s1117_s10 + $0x28] sm:$0xff] %v555_v6 }
 0x2f6   : > { %574 = vst [vmem:[%s1117_s10 + $0x40] sm:$0xff] %v558_v48  ;;  %575 = vst [vmem:[%s1117_s10 + $0x48] sm:$0xff] %v559_v49  ;;  %v533_v50 = vpop.permute.xlu1 %532  ;;  %v545_v51 = vpop.permute.xlu0 %544 }
 0x2f7   : > { %v556_v2 = vmul.f32 %v533_v50, %v1035_v8  ;;  %v557_v52 = vmul.f32 %v533_v50, %v1037_v9  ;;  %v562_v4 = vmul.f32 %v545_v51, %v1055_v18  ;;  %v563_v12 = vmul.f32 %v545_v51, %v1057_v19 }
 0x2f9   : > { %572 = vst [vmem:[%s1117_s10 + $0x30] sm:$0xff] %v556_v2  ;;  %573 = vst [vmem:[%s1117_s10 + $0x38] sm:$0xff] %v557_v52 }
 0x2fa   : > { %578 = vst [vmem:[%s1117_s10 + $0x60] sm:$0xff] %v562_v4  ;;  %579 = vst [vmem:[%s1117_s10 + $0x68] sm:$0xff] %v563_v12  ;;  %v541_v13 = vpop.permute.xlu1 %540 }
 0x2fb   : > { %v560_v53 = vmul.f32 %v541_v13, %v1047_v14  ;;  %v561_v54 = vmul.f32 %v541_v13, %v1049_v15 }
 0x2fd   : > { %576 = vst [vmem:[%s1117_s10 + $0x50] sm:$0xff] %v560_v53  ;;  %577 = vst [vmem:[%s1117_s10 + $0x58] sm:$0xff] %v561_v54 }
 0x2fe   : > { %v549_v8 = vpop.permute.xlu1 %548 }
 0x2ff   : > { %v564_v9 = vmul.f32 %v549_v8, %v1059_v20  ;;  %v565_v14 = vmul.f32 %v549_v8, %v1061_v21 }
 0x301   : > { %580 = vst [vmem:[%s1117_s10 + $0x70] sm:$0xff] %v564_v9  ;;  %581 = vst [vmem:[%s1117_s10 + $0x78] sm:$0xff] %v565_v14 }
 0x302   : > { %821 = shalt.err (!%p818_p10)
}
 0x303   : > { %s822_s15 = scalar_lea.hbm %s1148_s26, 2048  ;;  %s826_s7 = scalar_lea.hbm %s1202_s5, 4096 }
 0x304   : > { %p823_p0 = scmp.ne.s32.totalorder %s1148_s26, %s822_s15  ;;  %p827_p1 = scmp.lt.s32.totalorder %s1148_s26, %s1202_s5 }
 0x305   : > { %p828_p3 = scmp.lt.s32.totalorder %s826_s7, %s822_s15 }
 0x306   : > { %p824_p2 = pnand %p823_p0, %p1211_p12 }
 0x307   : > { %p829_p6 = por %p828_p3, %p827_p1 }
 0x308   : > { %p825_p9 = pneg %p824_p2 }
 0x30a   : > { %p830_p11 = pnand %p829_p6, %p825_p9 }
 0x30c   : > { %833 = shalt.err (!%p830_p11)
}
 0x30d   : > { %s880_s25 = smov 256   ;;  %s881_s13 = smov 16  }
 0x30e   : > { %726 = dma.vmem_to_hbm [thread:$0]  (%p1211_p12), %s1150_s11, 2048, %s1148_s26, %s583_s22, %s880_s25, %s880_s25, %s881_s13  }
 0x30f PF: > { %s611_s17 = sand.u32 1, %s860_s18   ;;  %p1212_p13 = scmp.ne.s32.totalorder %s1208_s6, 0 }
 0x310   : > { %p1213_p4 = scmp.ge.s32.totalorder %s872_s21, 2  ;;  %s612_s28 = scalar_lea.sflag [#allocation4], %s611_s17 }
 0x312   : > { %p733_p5 = pnand %p1213_p4, %p1212_p13 }
 0x314   : > { %p734_p7 = pneg %p733_p5 }
 0x316   : > { %855 = dma.done.wait (%p734_p7), %s612_s28, 2048  }
 0x317   : > { %857 = vsyncadd (%p734_p7), %s612_s28, 4294965248  ;;  %p18_p8 = scmp.ge.s32.totalorder %s937_s24, 4   ;;  %s1214_s18 = smov %s864_s19 }
 0x318   : > { %s1215_s19 = smov %s868_s20  ;;  %s1216_s20 = smov %s949_s27 }
 0x319   : > { %s1217_s21 = smov %s937_s24  ;;  %20 = sbr.rel (!%p18_p8) target bundleno = 5 (0x5), region = 85 }
 0x31e   :  { %617 = vsyncpa [#allocation3], 1 }
 0x31f   :  { %619 = vsyncpa [#allocation3 + $0x1], 1 }
 0x320   :  { %620 = vsyncpa [#allocation4], 1 }
 0x321   :  { %622 = vsyncpa [#allocation4 + $0x1], 1 }

</bundles_post_ra>
